<compile_context>
chip_gen: v7x
topology: tpu7x:2x2x1
jax: 0.10.0
libtpu: 0.0.40
codegen_flags: <defaults>
</compile_context>

<pallas_src>
import jax
import jax.numpy as jnp
from jax.experimental import pallas as pl
from jax.experimental.pallas import tpu as pltpu

IN_FEATURES = 8
HIDDEN = 256
OUT_FEATURES = 3
OUT_PAD = 128          # lane-dense padded width of the last layer / output slab
TILE_CAP = 4096        # rows per grid step (amortizes ~0.35us/step overhead)


def _mlp_kernel(x_ref,
                w1_ref, b1_ref,
                w2_ref, b2_ref,
                w3_ref, b3_ref,
                w4_ref, b4_ref,
                o_ref):
    # Whole forward pass fused per batch tile. Matmuls in bf16 (native MXU rate on
    # v5e/v6e/v7x) with f32 accumulation; bias add + ReLU in f32.
    x = x_ref[...]  # already bf16, (tile, 8)

    # TODO(synk): experiment — compute layer 1 (K=8) as 8 VPU broadcast-FMAs instead of
    # an MXU dot (MXU push count is set by M, so K=8 wastes ~1/4 of MXU time); verify
    # vmatmul counts in the bundle dump before committing.
    h = jnp.dot(x, w1_ref[...], preferred_element_type=jnp.float32) + b1_ref[...]
    h = jnp.maximum(h, 0.0).astype(jnp.bfloat16)

    h = jnp.dot(h, w2_ref[...], preferred_element_type=jnp.float32) + b2_ref[...]
    h = jnp.maximum(h, 0.0).astype(jnp.bfloat16)

    h = jnp.dot(h, w3_ref[...], preferred_element_type=jnp.float32) + b3_ref[...]
    h = jnp.maximum(h, 0.0).astype(jnp.bfloat16)

    # Last layer is zero-padded to 128 output columns -> full-lane store, padded cols
    # are exactly zero and get sliced off in the wrapper.
    out = jnp.dot(h, w4_ref[...], preferred_element_type=jnp.float32) + b4_ref[...]
    o_ref[...] = out.astype(o_ref.dtype)


def _round_up(n, m):
    return ((n + m - 1) // m) * m


def _num_tensorcores():
    """Best-effort TensorCores-per-chip: 2 on v7x (grid split across cores), else 1."""
    try:
        dev = jax.devices()[0]
        kind = (getattr(dev, "device_kind", "") or "").lower()
        if "v7" in kind or "7x" in kind:
            return 2
        return int(getattr(dev, "num_cores", 1)) or 1
    except Exception:
        return 1


def _pick_tiling(batch, num_cores, cap=TILE_CAP):
    """Choose (batch_tile, padded_batch).

    * Single-TC chips: one full-batch block up to `cap` rows (serial grid, so extra
      steps are pure overhead).
    * v7x (2 TCs): step count is a multiple of num_cores so the 'parallel' batch axis
      load-balances across both TensorCores.
    * cap=4096 keeps the per-step working set at ~15-20 MiB, well inside VMEM on every
      generation, while making MXU work per step >> the fixed per-step overhead.
    """
    b8 = _round_up(max(batch, 1), 8)
    steps = max(1, -(-b8 // cap))
    if num_cores > 1 and b8 > 8 * num_cores:
        steps = _round_up(max(steps, num_cores), num_cores)
    tile = _round_up(-(-b8 // steps), 8)
    return tile, _round_up(b8, tile)


def prepare_params(params):
    """One-time param prep (do NOT call per forward):

    * weights -> bf16 (native MXU rate, half the HBM traffic),
    * biases  -> (1, N) f32 (rank-2 constant-index BlockSpecs),
    * last layer zero-padded to OUT_PAD=128 output columns (lane-dense store).
    """
    def bias2d(b):
        return jnp.asarray(b, jnp.float32).reshape(1, -1)

    w1 = jnp.asarray(params["w1"], jnp.bfloat16)
    w2 = jnp.asarray(params["w2"], jnp.bfloat16)
    w3 = jnp.asarray(params["w3"], jnp.bfloat16)
    w4 = jnp.asarray(params["w4"], jnp.float32)
    b4 = bias2d(params["b4"])
    assert w1.shape == (IN_FEATURES, HIDDEN) and w4.shape == (HIDDEN, OUT_FEATURES)

    pad = OUT_PAD - OUT_FEATURES
    w4p = jnp.pad(w4, ((0, 0), (0, pad))).astype(jnp.bfloat16)
    b4p = jnp.pad(b4, ((0, 0), (0, pad)))
    # TODO(synk): optional v7x-only fp8 path for w2/w3 (per-channel scales, f32 acc),
    # gated on an accuracy check.
    return dict(w1=w1, b1=bias2d(params["b1"]),
                w2=w2, b2=bias2d(params["b2"]),
                w3=w3, b3=bias2d(params["b3"]),
                w4=w4p, b4=b4p)


def agent_brain_forward(x, params, *, batch_tile=None):
    """AgentBrain MLP forward with a fused Pallas TPU kernel.

    x: (B, 8) float32 (or bf16); params: output of prepare_params().
    Returns (B, 3) float32.
    """
    batch, in_dim = x.shape
    assert in_dim == IN_FEATURES
    if batch_tile is None:
        batch_tile, padded = _pick_tiling(batch, _num_tensorcores())
    else:
        assert batch_tile == batch or batch_tile % 8 == 0, \
            "batch_tile must be a multiple of 8 (sublane constraint) or the full batch"
        padded = _round_up(batch, batch_tile)
    grid = (padded // batch_tile,)

    # bf16 input halves x's HBM/DMA traffic; zero-pad the batch so irregular sizes keep
    # tiling / pipelining / the v7x core split.  (Transposed (8, B) x would additionally
    # make the input lane-dense; cast-only is the low-risk variant.)
    x_p = x.astype(jnp.bfloat16)
    if padded != batch:
        x_p = jnp.pad(x_p, ((0, padded - batch), (0, 0)))

    # Weights/biases: full-array blocks with constant (0,0) index maps -> DMA'd once and
    # resident in VMEM across all grid steps.  (Default double-buffering on them wastes
    # only ~0.3 MiB, which is immaterial here, so pipeline_mode is left at default.)
    full = lambda shape: pl.BlockSpec(shape, lambda i: (0, 0))

    out = pl.pallas_call(
        _mlp_kernel,
        out_shape=jax.ShapeDtypeStruct((padded, OUT_PAD), jnp.float32),
        grid_spec=pltpu.PrefetchScalarGridSpec(
            num_scalar_prefetch=0,
            grid=grid,
            in_specs=[
                pl.BlockSpec((batch_tile, IN_FEATURES), lambda i: (i, 0)),  # x tile
                full(params["w1"].shape), full(params["b1"].shape),
                full(params["w2"].shape), full(params["b2"].shape),
                full(params["w3"].shape), full(params["b3"].shape),
                full(params["w4"].shape), full(params["b4"].shape),
            ],
            out_specs=pl.BlockSpec((batch_tile, OUT_PAD), lambda i: (i, 0)),
        ),
        compiler_params=pltpu.CompilerParams(
            dimension_semantics=("parallel",),
            vmem_limit_bytes=48 * 1024 * 1024,
        ),
    )(x_p, params["w1"], params["b1"], params["w2"], params["b2"],
      params["w3"], params["b3"], params["w4"], params["b4"])

    # Drop batch padding and the zero-padded output lanes.
    return out[:batch, :OUT_FEATURES]


def init_params(key):
    """Deterministic init matching nn.Linear's U(-1/sqrt(fan_in), 1/sqrt(fan_in))."""
    dims = [(IN_FEATURES, HIDDEN), (HIDDEN, HIDDEN), (HIDDEN, HIDDEN), (HIDDEN, OUT_FEATURES)]
    params = {}
    for idx, (fan_in, fan_out) in enumerate(dims, start=1):
        key, kw, kb = jax.random.split(key, 3)
        bound = 1.0 / jnp.sqrt(jnp.float32(fan_in))
        params[f"w{idx}"] = jax.random.uniform(
            kw, (fan_in, fan_out), jnp.float32, -bound, bound)
        params[f"b{idx}"] = jax.random.uniform(
            kb, (1, fan_out), jnp.float32, -bound, bound)
    return params


def reference_forward(x, params):
    h = jnp.maximum(x @ params["w1"] + params["b1"], 0.0)
    h = jnp.maximum(h @ params["w2"] + params["b2"], 0.0)
    h = jnp.maximum(h @ params["w3"] + params["b3"], 0.0)
    return h @ params["w4"] + params["b4"]


if __name__ == "__main__":
    key = jax.random.PRNGKey(0)
    key, kx = jax.random.split(key)
    raw_params = init_params(key)
    params = prepare_params(raw_params)   # one-time: bf16 weights, padded last layer

    batch = 8
    x = jax.random.normal(kx, (batch, IN_FEATURES), jnp.float32)

    fwd = jax.jit(agent_brain_forward)
    out = jax.block_until_ready(fwd(x, params))

    ref = reference_forward(x, raw_params)
    assert out.shape == (batch, OUT_FEATURES)
    # bf16 matmuls vs. f32 reference: loosened tolerance (~1e-2 relative expected).
    assert jnp.allclose(out, ref, atol=5e-2, rtol=5e-2), "mismatch vs. JAX reference"

    print("KERNEL_OK")
</pallas_src>

<mosaic_0001>
module attributes {stable_mosaic.version = 11 : i64} {
  func.func @_mlp_kernel(%arg0: i32, %arg1: memref<8x8xbf16, #tpu.memory_space<vmem>>, %arg2: memref<8x256xbf16, #tpu.memory_space<vmem>>, %arg3: memref<1x256xf32, #tpu.memory_space<vmem>>, %arg4: memref<256x256xbf16, #tpu.memory_space<vmem>>, %arg5: memref<1x256xf32, #tpu.memory_space<vmem>>, %arg6: memref<256x256xbf16, #tpu.memory_space<vmem>>, %arg7: memref<1x256xf32, #tpu.memory_space<vmem>>, %arg8: memref<256x128xbf16, #tpu.memory_space<vmem>>, %arg9: memref<1x128xf32, #tpu.memory_space<vmem>>, %arg10: memref<8x128xf32, #tpu.memory_space<vmem>>) attributes {dimension_semantics = [#tpu.dimension_semantics<parallel>], iteration_bounds = array<i64: 1>, scalar_prefetch = 0 : i64, scratch_operands = 0 : i64, tpu.core_type = #tpu.core_type<tc>, window_params = [{transform_indices = @transform_0, window_bounds = array<i64: 8, 8>}, {pipeline_mode = #tpu.pipeline_mode<synchronous>, transform_indices = @transform_1, window_bounds = array<i64: 8, 256>}, {pipeline_mode = #tpu.pipeline_mode<synchronous>, transform_indices = @transform_2, window_bounds = array<i64: 1, 256>}, {pipeline_mode = #tpu.pipeline_mode<synchronous>, transform_indices = @transform_3, window_bounds = array<i64: 256, 256>}, {pipeline_mode = #tpu.pipeline_mode<synchronous>, transform_indices = @transform_4, window_bounds = array<i64: 1, 256>}, {pipeline_mode = #tpu.pipeline_mode<synchronous>, transform_indices = @transform_5, window_bounds = array<i64: 256, 256>}, {pipeline_mode = #tpu.pipeline_mode<synchronous>, transform_indices = @transform_6, window_bounds = array<i64: 1, 256>}, {pipeline_mode = #tpu.pipeline_mode<synchronous>, transform_indices = @transform_7, window_bounds = array<i64: 256, 128>}, {pipeline_mode = #tpu.pipeline_mode<synchronous>, transform_indices = @transform_8, window_bounds = array<i64: 1, 128>}, {transform_indices = @transform_9, window_bounds = array<i64: 8, 128>}]} {
    %c0 = arith.constant 0 : index
    %c0_0 = arith.constant 0 : index
    %0 = vector.load %arg1[%c0, %c0_0] : memref<8x8xbf16, #tpu.memory_space<vmem>>, vector<8x8xbf16>
    %c0_1 = arith.constant 0 : index
    %c0_2 = arith.constant 0 : index
    %1 = vector.load %arg2[%c0_1, %c0_2] : memref<8x256xbf16, #tpu.memory_space<vmem>>, vector<8x256xbf16>
    %cst = arith.constant dense<0.000000e+00> : vector<8x256xf32>
    %2 = tpu.matmul %0, %1, %cst {dimension_numbers = #tpu.dot_dimension_numbers<[1], [0], [0], [1], [0, 0, 1, 1], [], []>} : vector<8x8xbf16>, vector<8x256xbf16>, vector<8x256xf32> -> vector<8x256xf32>
    %c0_3 = arith.constant 0 : index
    %c0_4 = arith.constant 0 : index
    %3 = vector.load %arg3[%c0_3, %c0_4] : memref<1x256xf32, #tpu.memory_space<vmem>>, vector<1x256xf32>
    %4 = vector.broadcast %3 : vector<1x256xf32> to vector<8x256xf32>
    %5 = arith.addf %2, %4 : vector<8x256xf32>
    %cst_5 = arith.constant 0.000000e+00 : f32
    %6 = vector.broadcast %cst_5 : f32 to vector<8x256xf32>
    %7 = arith.maximumf %5, %6 : vector<8x256xf32>
    %8 = arith.truncf %7 : vector<8x256xf32> to vector<8x256xbf16>
    %c0_6 = arith.constant 0 : index
    %c0_7 = arith.constant 0 : index
    %9 = vector.load %arg4[%c0_6, %c0_7] : memref<256x256xbf16, #tpu.memory_space<vmem>>, vector<256x256xbf16>
    %cst_8 = arith.constant dense<0.000000e+00> : vector<8x256xf32>
    %10 = tpu.matmul %8, %9, %cst_8 {dimension_numbers = #tpu.dot_dimension_numbers<[1], [0], [0], [1], [0, 0, 1, 1], [], []>} : vector<8x256xbf16>, vector<256x256xbf16>, vector<8x256xf32> -> vector<8x256xf32>
    %c0_9 = arith.constant 0 : index
    %c0_10 = arith.constant 0 : index
    %11 = vector.load %arg5[%c0_9, %c0_10] : memref<1x256xf32, #tpu.memory_space<vmem>>, vector<1x256xf32>
    %12 = vector.broadcast %11 : vector<1x256xf32> to vector<8x256xf32>
    %13 = arith.addf %10, %12 : vector<8x256xf32>
    %cst_11 = arith.constant 0.000000e+00 : f32
    %14 = vector.broadcast %cst_11 : f32 to vector<8x256xf32>
    %15 = arith.maximumf %13, %14 : vector<8x256xf32>
    %16 = arith.truncf %15 : vector<8x256xf32> to vector<8x256xbf16>
    %c0_12 = arith.constant 0 : index
    %c0_13 = arith.constant 0 : index
    %17 = vector.load %arg6[%c0_12, %c0_13] : memref<256x256xbf16, #tpu.memory_space<vmem>>, vector<256x256xbf16>
    %cst_14 = arith.constant dense<0.000000e+00> : vector<8x256xf32>
    %18 = tpu.matmul %16, %17, %cst_14 {dimension_numbers = #tpu.dot_dimension_numbers<[1], [0], [0], [1], [0, 0, 1, 1], [], []>} : vector<8x256xbf16>, vector<256x256xbf16>, vector<8x256xf32> -> vector<8x256xf32>
    %c0_15 = arith.constant 0 : index
    %c0_16 = arith.constant 0 : index
    %19 = vector.load %arg7[%c0_15, %c0_16] : memref<1x256xf32, #tpu.memory_space<vmem>>, vector<1x256xf32>
    %20 = vector.broadcast %19 : vector<1x256xf32> to vector<8x256xf32>
    %21 = arith.addf %18, %20 : vector<8x256xf32>
    %cst_17 = arith.constant 0.000000e+00 : f32
    %22 = vector.broadcast %cst_17 : f32 to vector<8x256xf32>
    %23 = arith.maximumf %21, %22 : vector<8x256xf32>
    %24 = arith.truncf %23 : vector<8x256xf32> to vector<8x256xbf16>
    %c0_18 = arith.constant 0 : index
    %c0_19 = arith.constant 0 : index
    %25 = vector.load %arg8[%c0_18, %c0_19] : memref<256x128xbf16, #tpu.memory_space<vmem>>, vector<256x128xbf16>
    %cst_20 = arith.constant dense<0.000000e+00> : vector<8x128xf32>
    %26 = tpu.matmul %24, %25, %cst_20 {dimension_numbers = #tpu.dot_dimension_numbers<[1], [0], [0], [1], [0, 0, 1, 1], [], []>} : vector<8x256xbf16>, vector<256x128xbf16>, vector<8x128xf32> -> vector<8x128xf32>
    %c0_21 = arith.constant 0 : index
    %c0_22 = arith.constant 0 : index
    %27 = vector.load %arg9[%c0_21, %c0_22] : memref<1x128xf32, #tpu.memory_space<vmem>>, vector<1x128xf32>
    %28 = vector.broadcast %27 : vector<1x128xf32> to vector<8x128xf32>
    %29 = arith.addf %26, %28 : vector<8x128xf32>
    %c0_23 = arith.constant 0 : index
    %c0_24 = arith.constant 0 : index
    %30 = vector.load %arg10[%c0_23, %c0_24] : memref<8x128xf32, #tpu.memory_space<vmem>>, vector<8x128xf32>
    tpu.vector_store %arg10[%c0_23, %c0_24], %29 {strides = array<i32>} : memref<8x128xf32, #tpu.memory_space<vmem>>, vector<8x128xf32>,
    return
  }
  func.func @transform_0(%arg0: i32) -> (i32, i32) {
    %c0_i32 = arith.constant 0 : i32
    %c0_i32_0 = arith.constant 0 : i32
    return %arg0, %c0_i32 : i32, i32
  }
  func.func @transform_1(%arg0: i32) -> (i32, i32) {
    %c0_i32 = arith.constant 0 : i32
    %c0_i32_0 = arith.constant 0 : i32
    %c0_i32_1 = arith.constant 0 : i32
    return %c0_i32, %c0_i32_0 : i32, i32
  }
  func.func @transform_2(%arg0: i32) -> (i32, i32) {
    %c0_i32 = arith.constant 0 : i32
    %c0_i32_0 = arith.constant 0 : i32
    %c0_i32_1 = arith.constant 0 : i32
    return %c0_i32, %c0_i32_0 : i32, i32
  }
  func.func @transform_3(%arg0: i32) -> (i32, i32) {
    %c0_i32 = arith.constant 0 : i32
    %c0_i32_0 = arith.constant 0 : i32
    %c0_i32_1 = arith.constant 0 : i32
    return %c0_i32, %c0_i32_0 : i32, i32
  }
  func.func @transform_4(%arg0: i32) -> (i32, i32) {
    %c0_i32 = arith.constant 0 : i32
    %c0_i32_0 = arith.constant 0 : i32
    %c0_i32_1 = arith.constant 0 : i32
    return %c0_i32, %c0_i32_0 : i32, i32
  }
  func.func @transform_5(%arg0: i32) -> (i32, i32) {
    %c0_i32 = arith.constant 0 : i32
    %c0_i32_0 = arith.constant 0 : i32
    %c0_i32_1 = arith.constant 0 : i32
    return %c0_i32, %c0_i32_0 : i32, i32
  }
  func.func @transform_6(%arg0: i32) -> (i32, i32) {
    %c0_i32 = arith.constant 0 : i32
    %c0_i32_0 = arith.constant 0 : i32
    %c0_i32_1 = arith.constant 0 : i32
    return %c0_i32, %c0_i32_0 : i32, i32
  }
  func.func @transform_7(%arg0: i32) -> (i32, i32) {
    %c0_i32 = arith.constant 0 : i32
    %c0_i32_0 = arith.constant 0 : i32
    %c0_i32_1 = arith.constant 0 : i32
    return %c0_i32, %c0_i32_0 : i32, i32
  }
  func.func @transform_8(%arg0: i32) -> (i32, i32) {
    %c0_i32 = arith.constant 0 : i32
    %c0_i32_0 = arith.constant 0 : i32
    %c0_i32_1 = arith.constant 0 : i32
    return %c0_i32, %c0_i32_0 : i32, i32
  }
  func.func @transform_9(%arg0: i32) -> (i32, i32) {
    %c0_i32 = arith.constant 0 : i32
    %c0_i32_0 = arith.constant 0 : i32
    return %arg0, %c0_i32 : i32, i32
  }
}

</mosaic_0001>

<bundles_post_ra>
// kernel: agent_brain_forward.1
= control target key start
LH: loop header
LB: loop body
LE: loop exit
PB: predicated region body
PF: predicated region fallthrough
CT: control target
= control target key end

     0   :  { %14 = vsyncpa [#allocation3], 0  ;;  %s1260_s0 = inlined_call_operand.vmem [shape: bf16[8,8], index: 0, kind: input, shape index: {}]   ;;  %s1261_s1 = inlined_call_operand.vmem [shape: bf16[8,256], index: 1, kind: input, shape index: {}]   ;;  %s1262_s2 = inlined_call_operand.vmem [shape: f32[1,256], index: 2, kind: input, shape index: {}]   ;;  %s1263_s3 = inlined_call_operand.hbm [shape: bf16[256,256], index: 3, kind: input, shape index: {}]   ;;  %s1264_s4 = inlined_call_operand.vmem [shape: f32[1,256], index: 4, kind: input, shape index: {}]   ;;  %s1265_s5 = inlined_call_operand.hbm [shape: bf16[256,256], index: 5, kind: input, shape index: {}]   ;;  %s1266_s6 = inlined_call_operand.vmem [shape: f32[1,256], index: 6, kind: input, shape index: {}]   ;;  %s1267_s7 = inlined_call_operand.hbm [shape: bf16[256,128], index: 7, kind: input, shape index: {}]   ;;  %s1268_s8 = inlined_call_operand.vmem [shape: f32[1,128], index: 8, kind: input, shape index: {}]   ;;  %s1269_s9 = inlined_call_operand.vmem [shape: f32[8,128], index: 9, kind: output, shape index: {}]  }
   0x1   :  { %15 = vsyncpa [#allocation5], 0  ;;  %s1128_s30 = smov [#allocation4]   ;;  %s1129_s11 = smov [#allocation2]  }
   0x2   :  { %s41_s10 = sshll.u32 %s1128_s30, 4  ;;  %s27_s12 = sshll.u32 %s1129_s11, 4  ;;  %s42_s10 = int_to_ptr.vmem [resolvable:$true] %s41_s10  ;;  %s1186_s12 = int_to_ptr.vmem [resolvable:$true] %s27_s12 }
   0x3   :  { %s1058_s15 = scalar_lea.hbm %s1265_s5, 4096 }
   0x4   :  { %p1059_p0 = scmp.ne.s32.totalorder %s1265_s5, %s1058_s15  ;;  %p1062_p1 = scmp.lt.u32.totalorder %s1058_s15, %s1265_s5 }
   0x6   :  { %p1064_p2 = pnand %p1062_p1, %p1059_p0 }
   0x8   :  { %1067 = shalt.err (!%p1064_p2)
}
   0x9   :  { %s1068_s20 = scalar_lea.vmem %s42_s10, 4096  ;;  %p1073_p4 = scmp.lt.s32.totalorder %s42_s10, %s42_s10 }
   0xa   :  { %p1069_p3 = scmp.ne.s32.totalorder %s42_s10, %s1068_s20  ;;  %p1074_p5 = scmp.lt.s32.totalorder %s1068_s20, %s1068_s20 }
   0xc   :  { %p1075_p6 = por %p1074_p5, %p1073_p4 }
   0xe   :  { %p1076_p7 = pnand %p1075_p6, %p1069_p3 }
  0x10   :  { %1079 = shalt.err (!%p1076_p7)
}
  0x11   :  { %s1130_s21 = smov 128   ;;  %s1131_s22 = smov 8  }
  0x12   :  { %47 = dma.hbm_to_vmem [thread:$0]  %s1265_s5, 4096, %s42_s10, [#allocation5], %s1130_s21, %s1130_s21, %s1131_s22  }
  0x13   :  { %s1080_s27 = scalar_lea.hbm %s1263_s3, 4096 }
  0x14   :  { %p1081_p8 = scmp.ne.s32.totalorder %s1263_s3, %s1080_s27  ;;  %p1084_p9 = scmp.lt.u32.totalorder %s1080_s27, %s1263_s3 }
  0x16   :  { %p1086_p10 = pnand %p1084_p9, %p1081_p8 }
  0x18   :  { %1089 = shalt.err (!%p1086_p10)
}
  0x19   :  { %s1090_s13 = scalar_lea.vmem %s1186_s12, 4096  ;;  %p1095_p12 = scmp.lt.s32.totalorder %s1186_s12, %s1186_s12 }
  0x1a   :  { %p1091_p11 = scmp.ne.s32.totalorder %s1186_s12, %s1090_s13  ;;  %p1096_p13 = scmp.lt.s32.totalorder %s1090_s13, %s1090_s13 }
  0x1c   :  { %p1097_p0 = por %p1096_p13, %p1095_p12 }
  0x1e   :  { %p1098_p1 = pnand %p1097_p0, %p1091_p11 }
  0x20   :  { %1101 = shalt.err (!%p1098_p1)
}
  0x21   :  { %33 = dma.hbm_to_vmem [thread:$0]  %s1263_s3, 4096, %s1186_s12, [#allocation3], %s1130_s21, %s1130_s21, %s1131_s22  }
  0x22   :  { %s1132_s14 = smov [#allocation6]   ;;  %s1102_s18 = scalar_lea.hbm %s1267_s7, 2048 }
  0x23   :  { %s55_s15 = sshll.u32 %s1132_s14, 4  ;;  %p1103_p2 = scmp.ne.s32.totalorder %s1267_s7, %s1102_s18  ;;  %s56_s15 = int_to_ptr.vmem [resolvable:$true] %s55_s15 }
  0x24   :  { %p1106_p3 = scmp.lt.u32.totalorder %s1102_s18, %s1267_s7 }
  0x26   :  { %p1108_p4 = pnand %p1106_p3, %p1103_p2 }
  0x28   :  { %1111 = shalt.err (!%p1108_p4)
}
  0x29   :  { %s1112_s25 = scalar_lea.vmem %s56_s15, 2048  ;;  %p1117_p6 = scmp.lt.s32.totalorder %s56_s15, %s56_s15 }
  0x2a   :  { %p1113_p5 = scmp.ne.s32.totalorder %s56_s15, %s1112_s25  ;;  %p1118_p7 = scmp.lt.s32.totalorder %s1112_s25, %s1112_s25 }
  0x2c   :  { %p1119_p8 = por %p1118_p7, %p1117_p6 }
  0x2e   :  { %p1120_p9 = pnand %p1119_p8, %p1113_p5 }
  0x30   :  { %1123 = shalt.err (!%p1120_p9)
}
  0x31   :  { %s1133_s3 = smov 64   ;;  %s1134_s12 = smov 4  }
  0x32   :  { %61 = dma.hbm_to_vmem [thread:$0]  %s1267_s7, 2048, %s56_s15, [#allocation5], %s1133_s3, %s1133_s3, %s1134_s12  }
  0x33   :  { %1124 = dma.done.wait [#allocation3], 4096  }
  0x34   :  { %1125 = vsyncadd [#allocation3], 4294963200 }
  0x35   :  { %1126 = dma.done.wait [#allocation5], 6144  }
  0x36   :  { %1127 = vsyncadd [#allocation5], 4294961152  ;;  %v1135_v0 = vmov 0   ;;  %v75_v1 = vld [vmem:[%s1261_s1] sm:$0xff]  ;;  %vm97_vm0 = vcmask 1043456   ;;  %vm93_vm1 = vcmask 64512  }
  0x37   :  { %136 = vmatprep.mubr.bf16.mxu0 %v1135_v0  ;;  %v830_v2 = vcombine.high %v75_v1, %v75_v1  ;;  %v829_v3 = vcombine.low %v75_v1, %v75_v1  ;;  %v946_v4 = vld [vmem:[#allocation2 + $0x4] ss:$8 sps:$4 sm:$0xff]   ;;  %v948_v5 = vld [vmem:[#allocation2] ss:$8 sps:$4 sm:$0xff]   ;;  %v949_v6 = vld [vmem:[#allocation2 + $0x14] ss:$8 sps:$4 sm:$0xff]  }
  0x38   :  { %353 = vmatprep.subr.bf16.mxu1 %v946_v4  ;;  %v74_v8 = vld [vmem:[%s1260_s0] sm:$0xf]  ;;  %v951_v9 = vld [vmem:[#allocation2 + $0x10] ss:$8 sps:$4 sm:$0xff]   ;;  %v952_v10 = vld [vmem:[#allocation2 + $0x24] ss:$8 sps:$4 sm:$0xff]  }
  0x39   :  { %831 = vmatprep.subr.msk.bf16.mxu0 %vm97_vm0, %v830_v2  ;;  %v99_v7 = vsel %vm97_vm0, %v829_v3, 0  ;;  %354 = vmatpush1.bf16.msra.mxu1 %v948_v5  ;;  %v954_v11 = vld [vmem:[#allocation2 + $0x20] ss:$8 sps:$4 sm:$0xff]   ;;  %v955_v12 = vld [vmem:[#allocation2 + $0x34] ss:$8 sps:$4 sm:$0xff]   ;;  %v78_v2 = vlaneseq }
  0x3a   :  { %105 = vmatpush1.bf16.msra.mxu0 %v99_v7  ;;  %355 = vmatprep.subr.bf16.mxu1 %v949_v6  ;;  %v957_v13 = vld [vmem:[#allocation2 + $0x30] ss:$8 sps:$4 sm:$0xff]   ;;  %v958_v14 = vld [vmem:[#allocation2 + $0x44] ss:$8 sps:$4 sm:$0xff]   ;;  %v960_v15 = vld [vmem:[#allocation2 + $0x40] ss:$8 sps:$4 sm:$0xff]  }
  0x3b   :  { %v961_v16 = vld [vmem:[#allocation2 + $0x54] ss:$8 sps:$4 sm:$0xff]   ;;  %v963_v17 = vld [vmem:[#allocation2 + $0x50] ss:$8 sps:$4 sm:$0xff]   ;;  %v964_v18 = vld [vmem:[#allocation2 + $0x64] ss:$8 sps:$4 sm:$0xff]  }
  0x3c   :  { %v966_v19 = vld [vmem:[#allocation2 + $0x60] ss:$8 sps:$4 sm:$0xff]   ;;  %v967_v20 = vld [vmem:[#allocation2 + $0x74] ss:$8 sps:$4 sm:$0xff]   ;;  %v969_v21 = vld [vmem:[#allocation2 + $0x70] ss:$8 sps:$4 sm:$0xff]  }
  0x3d   :  { %832 = vmatmul.mubr.msk.bf16.vlgmr.msra.gmra.mrb[0].mxu0 %vm93_vm1, %v74_v8  ;;  %356 = vmatpush1.bf16.msra.mxu1 %v951_v9  ;;  %v970_v22 = vld [vmem:[#allocation2 + $0x84] ss:$8 sps:$4 sm:$0xff]   ;;  %v972_v23 = vld [vmem:[#allocation2 + $0x80] ss:$8 sps:$4 sm:$0xff]   ;;  %v973_v24 = vld [vmem:[#allocation2 + $0x94] ss:$8 sps:$4 sm:$0xff]  }
  0x3e   :  { %357 = vmatprep.subr.bf16.mxu1 %v952_v10  ;;  %v975_v25 = vld [vmem:[#allocation2 + $0x90] ss:$8 sps:$4 sm:$0xff]   ;;  %v976_v26 = vld [vmem:[#allocation2 + $0xa4] ss:$8 sps:$4 sm:$0xff]   ;;  %v978_v27 = vld [vmem:[#allocation2 + $0xa0] ss:$8 sps:$4 sm:$0xff]  }
  0x3f   :  { %v979_v28 = vld [vmem:[#allocation2 + $0xb4] ss:$8 sps:$4 sm:$0xff]   ;;  %v981_v29 = vld [vmem:[#allocation2 + $0xb0] ss:$8 sps:$4 sm:$0xff]   ;;  %v982_v30 = vld [vmem:[#allocation2 + $0xc4] ss:$8 sps:$4 sm:$0xff]  }
  0x40   :  { %v984_v31 = vld [vmem:[#allocation2 + $0xc0] ss:$8 sps:$4 sm:$0xff]   ;;  %v985_v32 = vld [vmem:[#allocation2 + $0xd4] ss:$8 sps:$4 sm:$0xff]   ;;  %v987_v33 = vld [vmem:[#allocation2 + $0xd0] ss:$8 sps:$4 sm:$0xff]  }
  0x41   :  { %358 = vmatpush1.bf16.msra.mxu1 %v954_v11  ;;  %v988_v34 = vld [vmem:[#allocation2 + $0xe4] ss:$8 sps:$4 sm:$0xff]   ;;  %v990_v35 = vld [vmem:[#allocation2 + $0xe0] ss:$8 sps:$4 sm:$0xff]   ;;  %v991_v36 = vld [vmem:[#allocation2 + $0xf4] ss:$8 sps:$4 sm:$0xff]  }
  0x42   :  { %359 = vmatprep.subr.bf16.mxu1 %v955_v12  ;;  %v993_v37 = vld [vmem:[#allocation2 + $0xf0] ss:$8 sps:$4 sm:$0xff]   ;;  %v994_v38 = vld [vmem:[#allocation4] ss:$8 sps:$4 sm:$0xff]   ;;  %v996_v39 = vld [vmem:[#allocation4 + $0x4] ss:$8 sps:$4 sm:$0xff]  }
  0x43   :  { %v999_v40 = vld [vmem:[#allocation4 + $0x14] ss:$8 sps:$4 sm:$0xff]   ;;  %602 = vmatprep.subr.bf16.mxu0 %v996_v39  ;;  %v997_v41 = vld [vmem:[#allocation4 + $0x10] ss:$8 sps:$4 sm:$0xff]   ;;  %v1002_v42 = vld [vmem:[#allocation4 + $0x24] ss:$8 sps:$4 sm:$0xff]  }
  0x44   :  { %603 = vmatpush1.bf16.msra.mxu0 %v994_v38  ;;  %v1000_v43 = vld [vmem:[#allocation4 + $0x20] ss:$8 sps:$4 sm:$0xff]   ;;  %v1005_v44 = vld [vmem:[#allocation4 + $0x34] ss:$8 sps:$4 sm:$0xff]   ;;  %v1003_v45 = vld [vmem:[#allocation4 + $0x30] ss:$8 sps:$4 sm:$0xff]  }
  0x45   :  { %360 = vmatpush1.bf16.msra.mxu1 %v957_v13  ;;  %604 = vmatprep.subr.bf16.mxu0 %v999_v40  ;;  %v1008_v46 = vld [vmem:[#allocation4 + $0x44] ss:$8 sps:$4 sm:$0xff]   ;;  %v1006_v47 = vld [vmem:[#allocation4 + $0x40] ss:$8 sps:$4 sm:$0xff]   ;;  %v1011_v48 = vld [vmem:[#allocation4 + $0x54] ss:$8 sps:$4 sm:$0xff]  }
  0x46   :  { %361 = vmatprep.subr.bf16.mxu1 %v958_v14  ;;  %v1009_v49 = vld [vmem:[#allocation4 + $0x50] ss:$8 sps:$4 sm:$0xff]   ;;  %v1014_v50 = vld [vmem:[#allocation4 + $0x64] ss:$8 sps:$4 sm:$0xff]   ;;  %v1012_v51 = vld [vmem:[#allocation4 + $0x60] ss:$8 sps:$4 sm:$0xff]  }
  0x47   :  { %v1017_v52 = vld [vmem:[#allocation4 + $0x74] ss:$8 sps:$4 sm:$0xff]   ;;  %v1015_v53 = vld [vmem:[#allocation4 + $0x70] ss:$8 sps:$4 sm:$0xff]   ;;  %v1020_v54 = vld [vmem:[#allocation4 + $0x84] ss:$8 sps:$4 sm:$0xff]  }
  0x48   :  { %605 = vmatpush1.bf16.msra.mxu0 %v997_v41  ;;  %v1018_v55 = vld [vmem:[#allocation4 + $0x80] ss:$8 sps:$4 sm:$0xff]   ;;  %v1023_v56 = vld [vmem:[#allocation4 + $0x94] ss:$8 sps:$4 sm:$0xff]   ;;  %v1021_v57 = vld [vmem:[#allocation4 + $0x90] ss:$8 sps:$4 sm:$0xff]  }
  0x49   :  { %362 = vmatpush1.bf16.msra.mxu1 %v960_v15  ;;  %606 = vmatprep.subr.bf16.mxu0 %v1002_v42  ;;  %v1026_v58 = vld [vmem:[#allocation4 + $0xa4] ss:$8 sps:$4 sm:$0xff]   ;;  %v1024_v59 = vld [vmem:[#allocation4 + $0xa0] ss:$8 sps:$4 sm:$0xff]   ;;  %v1029_v60 = vld [vmem:[#allocation4 + $0xb4] ss:$8 sps:$4 sm:$0xff]  }
  0x4a   :  { %363 = vmatprep.subr.bf16.mxu1 %v961_v16  ;;  %v1027_v61 = vld [vmem:[#allocation4 + $0xb0] ss:$8 sps:$4 sm:$0xff]   ;;  %v1032_v62 = vld [vmem:[#allocation4 + $0xc4] ss:$8 sps:$4 sm:$0xff]   ;;  %v1030_v63 = vld [vmem:[#allocation4 + $0xc0] ss:$8 sps:$4 sm:$0xff]  }
  0x4b   :  { %v1035_v0 = vld [vmem:[#allocation4 + $0xd4] ss:$8 sps:$4 sm:$0xff]   ;;  %v1033_v1 = vld [vmem:[#allocation4 + $0xd0] ss:$8 sps:$4 sm:$0xff]   ;;  %v79_v3 = vshrl.u32 %v78_v2, 7 }
  0x4c   :  { %607 = vmatpush1.bf16.msra.mxu0 %v1000_v43  ;;  %v76_v5 = vld [vmem:[%s1262_s2] sm:$0x3] }
  0x4d   :  { %364 = vmatpush1.bf16.msra.mxu1 %v963_v17  ;;  %608 = vmatprep.subr.bf16.mxu0 %v1005_v44  ;;  %v1235_v4 = vsub.s32 0, %v79_v3  ;;  %v1240_v6 = vsub.s32 1, %v79_v3  ;;  %v897_v2 = vld [vmem:[%s1268_s8] ss:$0 sm:$0xff] }
  0x4e   :  { %365 = vmatprep.subr.bf16.mxu1 %v964_v18 }
  0x4f   :  { %v81_v7 = vrot.slane %v76_v5, %v1235_v4  ;;  %v85_v8 = vrot.slane %v76_v5, %v1240_v6 }
  0x50   :  { %609 = vmatpush1.bf16.msra.mxu0 %v1003_v45 }
  0x51   :  { %366 = vmatpush1.bf16.msra.mxu1 %v966_v19  ;;  %610 = vmatprep.subr.bf16.mxu0 %v1008_v46  ;;  %v1038_v19 = vld [vmem:[#allocation4 + $0xe4] ss:$8 sps:$4 sm:$0xff]  }
  0x52   :  { %367 = vmatprep.subr.bf16.mxu1 %v967_v20  ;;  %v1036_v20 = vld [vmem:[#allocation4 + $0xe0] ss:$8 sps:$4 sm:$0xff]  }
  0x54   :  { %611 = vmatpush1.bf16.msra.mxu0 %v1006_v47 }
  0x55   :  { %368 = vmatpush1.bf16.msra.mxu1 %v969_v21  ;;  %612 = vmatprep.subr.bf16.mxu0 %v1011_v48  ;;  %v1041_v21 = vld [vmem:[#allocation4 + $0xf4] ss:$8 sps:$4 sm:$0xff]  }
  0x56   :  { %369 = vmatprep.subr.bf16.mxu1 %v970_v22  ;;  %v1039_v22 = vld [vmem:[#allocation4 + $0xf0] ss:$8 sps:$4 sm:$0xff]  }
  0x57   :  { %v1054_v48 = vld [vmem:[#allocation6 + $0x70] sm:$0xff]  }
  0x58   :  { %613 = vmatpush1.bf16.msra.mxu0 %v1009_v49  ;;  %v1055_v49 = vld [vmem:[#allocation6 + $0x30] sm:$0xff]  }
  0x59   :  { %370 = vmatpush1.bf16.msra.mxu1 %v972_v23  ;;  %614 = vmatprep.subr.bf16.mxu0 %v1014_v50  ;;  %v1042_v23 = vld [vmem:[#allocation6 + $0x40] sm:$0xff]   ;;  %v1056_v50 = vld [vmem:[#allocation6 + $0x78] sm:$0xff]  }
  0x5a   :  { %371 = vmatprep.subr.bf16.mxu1 %v973_v24  ;;  %v1043_v24 = vld [vmem:[#allocation6] sm:$0xff]  }
  0x5c   :  { %615 = vmatpush1.bf16.msra.mxu0 %v1012_v51  ;;  %v1057_v51 = vld [vmem:[#allocation6 + $0x38] sm:$0xff]  }
  0x5d   :  { %372 = vmatpush1.bf16.msra.mxu1 %v975_v25  ;;  %616 = vmatprep.subr.bf16.mxu0 %v1017_v52  ;;  %v1044_v25 = vld [vmem:[#allocation6 + $0x48] sm:$0xff]   ;;  %v430_v52 = vld [vmem:[%s1266_s6] sm:$0x3] }
  0x5e   :  { %373 = vmatprep.subr.bf16.mxu1 %v976_v26  ;;  %v1045_v26 = vld [vmem:[#allocation6 + $0x8] sm:$0xff]  }
  0x60   :  { %617 = vmatpush1.bf16.msra.mxu0 %v1015_v53  ;;  %v435_v53 = vrot.slane %v430_v52, %v1235_v4 }
  0x61   :  { %374 = vmatpush1.bf16.msra.mxu1 %v978_v27  ;;  %618 = vmatprep.subr.bf16.mxu0 %v1020_v54  ;;  %v1046_v27 = vld [vmem:[#allocation6 + $0x50] sm:$0xff]   ;;  %v439_v54 = vrot.slane %v430_v52, %v1240_v6 }
  0x62   :  { %375 = vmatprep.subr.bf16.mxu1 %v979_v28  ;;  %v1047_v28 = vld [vmem:[#allocation6 + $0x10] sm:$0xff]  }
  0x64   :  { %619 = vmatpush1.bf16.msra.mxu0 %v1018_v55 }
  0x65   :  { %376 = vmatpush1.bf16.msra.mxu1 %v981_v29  ;;  %620 = vmatprep.subr.bf16.mxu0 %v1023_v56  ;;  %v1048_v29 = vld [vmem:[#allocation6 + $0x58] sm:$0xff]  }
  0x66   :  { %377 = vmatprep.subr.bf16.mxu1 %v982_v30  ;;  %v1049_v30 = vld [vmem:[#allocation6 + $0x18] sm:$0xff]  }
  0x68   :  { %621 = vmatpush1.bf16.msra.mxu0 %v1021_v57 }
  0x69   :  { %378 = vmatpush1.bf16.msra.mxu1 %v984_v31  ;;  %622 = vmatprep.subr.bf16.mxu0 %v1026_v58  ;;  %v1050_v31 = vld [vmem:[#allocation6 + $0x60] sm:$0xff]  }
  0x6a   :  { %379 = vmatprep.subr.bf16.mxu1 %v985_v32  ;;  %v1051_v32 = vld [vmem:[#allocation6 + $0x20] sm:$0xff]  }
  0x6c   :  { %623 = vmatpush1.bf16.msra.mxu0 %v1024_v59 }
  0x6d   :  { %380 = vmatpush1.bf16.msra.mxu1 %v987_v33  ;;  %624 = vmatprep.subr.bf16.mxu0 %v1029_v60  ;;  %v1052_v33 = vld [vmem:[#allocation6 + $0x68] sm:$0xff]  }
  0x6e   :  { %381 = vmatprep.subr.bf16.mxu1 %v988_v34  ;;  %v1053_v34 = vld [vmem:[#allocation6 + $0x28] sm:$0xff]  }
  0x70   :  { %625 = vmatpush1.bf16.msra.mxu0 %v1027_v61 }
  0x71   :  { %382 = vmatpush1.bf16.msra.mxu1 %v990_v35  ;;  %626 = vmatprep.subr.bf16.mxu0 %v1032_v62  ;;  %v181_v35 = vld [vmem:[%s1264_s4] sm:$0x3] }
  0x72   :  { %383 = vmatprep.subr.bf16.mxu1 %v991_v36  ;;  %v186_v36 = vrot.slane %v181_v35, %v1235_v4 }
  0x74   :  { %627 = vmatpush1.bf16.msra.mxu0 %v1030_v63 }
  0x75   :  { %384 = vmatpush1.bf16.msra.mxu1 %v993_v37  ;;  %628 = vmatprep.subr.bf16.mxu0 %v1035_v0  ;;  %v190_v37 = vrot.slane %v181_v35, %v1240_v6 }
  0x76   :  { %914 = vmatprep.subr.bf16.mxu1 %v1042_v23 }
  0x78   :  { %629 = vmatpush1.bf16.msra.mxu0 %v1033_v1 }
  0x79   :  { %630 = vmatprep.subr.bf16.mxu0 %v1038_v19 }
  0x7c   :  { %631 = vmatpush1.bf16.msra.mxu0 %v1036_v20 }
  0x7d   :  { %632 = vmatprep.subr.bf16.mxu0 %v1041_v21 }
  0x80   :  { %633 = vmatpush1.bf16.msra.mxu0 %v1039_v22 }
 0x110   :  { %v138_v9 = vpop.f32.mrb[0].mxu0 }
 0x111   :  { %v139_v10 = vadd.f32 %v138_v9, %v81_v7  ;;  %v140_v11 = vpop.f32.mrb[1].mxu0 }
 0x112   :  { %v141_v12 = vadd.f32 %v140_v11, %v85_v8  ;;  %v142_v13 = vpop.f32.mrb[2].mxu0 }
 0x113   :  { %v145_v14 = vmax.f32 %v139_v10, 0.0  ;;  %v143_v15 = vpop.f32.mrb[3].mxu0 }
 0x114   :  { %v146_v16 = vmax.f32 %v141_v12, 0.0 }
 0x115   :  { %v147_v18 = vpack.c.bf16 %v145_v14, %v145_v14 }
 0x116   :  { %v148_v17 = vpack.c.bf16 %v146_v16, %v146_v16 }
 0x118   :  { %385 = vmatprep.mubr.bf16.mxu1 %v148_v17 }
 0x119   :  { %386 = vmatmul.mubr.bf16.vlgmr.msra.gmra.mrb[0].mxu1 %v147_v18 }
 0x11a   :  { %915 = vmatpush3.bf16.msra.mxu1 %v1043_v24 }
 0x11b   :  { %916 = vmatprep.subr.bf16.mxu1 %v1044_v25 }
 0x11e   :  { %917 = vmatpush3.bf16.msra.mxu1 %v1045_v26 }
 0x11f   :  { %918 = vmatprep.subr.bf16.mxu1 %v1046_v27 }
 0x122   :  { %919 = vmatpush3.bf16.msra.mxu1 %v1047_v28 }
 0x123   :  { %920 = vmatprep.subr.bf16.mxu1 %v1048_v29 }
 0x126   :  { %921 = vmatpush3.bf16.msra.mxu1 %v1049_v30 }
 0x127   :  { %922 = vmatprep.subr.bf16.mxu1 %v1050_v31 }
 0x12a   :  { %923 = vmatpush3.bf16.msra.mxu1 %v1051_v32 }
 0x12b   :  { %924 = vmatprep.subr.bf16.mxu1 %v1052_v33 }
 0x12e   :  { %925 = vmatpush3.bf16.msra.mxu1 %v1053_v34 }
 0x12f   :  { %926 = vmatprep.subr.bf16.mxu1 %v1054_v48 }
 0x132   :  { %927 = vmatpush3.bf16.msra.mxu1 %v1055_v49 }
 0x133   :  { %928 = vmatprep.subr.bf16.mxu1 %v1056_v50 }
 0x136   :  { %929 = vmatpush3.bf16.msra.mxu1 %v1057_v51 }
 0x1ec   :  { %v387_v38 = vpop.f32.mrb[0].mxu1 }
 0x1ed   :  { %v388_v39 = vadd.f32 %v387_v38, %v186_v36  ;;  %v389_v40 = vpop.f32.mrb[1].mxu1 }
 0x1ee   :  { %v390_v41 = vadd.f32 %v389_v40, %v190_v37  ;;  %v391_v42 = vpop.f32.mrb[2].mxu1 }
 0x1ef   :  { %v394_v43 = vmax.f32 %v388_v39, 0.0  ;;  %v392_v44 = vpop.f32.mrb[3].mxu1 }
 0x1f0   :  { %v395_v45 = vmax.f32 %v390_v41, 0.0 }
 0x1f1   :  { %v396_v47 = vpack.c.bf16 %v394_v43, %v394_v43 }
 0x1f2   :  { %v397_v46 = vpack.c.bf16 %v395_v45, %v395_v45 }
 0x1f4   :  { %634 = vmatprep.mubr.bf16.mxu0 %v397_v46 }
 0x1f5   :  { %635 = vmatmul.mubr.bf16.vlgmr.msra.gmra.mrb[4].mxu0 %v396_v47 }
 0x2c8   :  { %v636_v55 = vpop.f32.mrb[4].mxu0 }
 0x2c9   :  { %v637_v56 = vadd.f32 %v636_v55, %v435_v53  ;;  %v638_v57 = vpop.f32.mrb[5].mxu0 }
 0x2ca   :  { %v639_v58 = vadd.f32 %v638_v57, %v439_v54  ;;  %v640_v59 = vpop.f32.mrb[6].mxu0 }
 0x2cb   :  { %v643_v60 = vmax.f32 %v637_v56, 0.0  ;;  %v641_v61 = vpop.f32.mrb[7].mxu0 }
 0x2cc   :  { %v644_v62 = vmax.f32 %v639_v58, 0.0 }
 0x2cd   :  { %v645_v0 = vpack.c.bf16 %v643_v60, %v643_v60 }
 0x2ce   :  { %v646_v63 = vpack.c.bf16 %v644_v62, %v644_v62 }
 0x2d0   :  { %814 = vmatprep.mubr.bf16.mxu1 %v646_v63 }
 0x2d1   :  { %815 = vmatmul.mubr.bf16.vlgmr.msra.gmra.mrb[4].mxu1 %v645_v0 }
 0x3a4   :  { %v930_v1 = vpop.f32.mrb[4].mxu1 }
 0x3a5   :  { %v931_v3 = vpop.f32.mrb[5].mxu1 }
 0x3a6   :  { %v932_v4 = vadd.f32 %v931_v3, %v930_v1  ;;  %v933_v5 = vpop.f32.mrb[6].mxu1 }
 0x3a7   :  { %v934_v6 = vpop.f32.mrb[7].mxu1 }
 0x3a8   :  { %v817_v7 = vadd.f32 %v932_v4, %v897_v2 }
 0x3aa   :  { %822 = vst [vmem:[%s1269_s9] sm:$0xff] %v817_v7 }
 0x3ab   :  { %827 = vsyncpa [#allocation3], 1 }
 0x3ac   :  { %828 = vsyncpa [#allocation5], 1 }

</bundles_post_ra>
